<compile_context>
chip_gen: v5e
topology: v5e:2x2
jax: 0.10.0
libtpu: 0.0.40
codegen_flags: <defaults>
</compile_context>

<pallas_src>
import jax
import jax.numpy as jnp
import numpy as np
from jax.experimental import pallas as pl
from jax.experimental.pallas import tpu as pltpu


def _actnorm_tile_kernel(x_ref, loc_ref, sinv_ref, y_ref):
    # x_ref, y_ref:      (row_blk, lane_blk)  VMEM
    # loc_ref, sinv_ref: (row_blk, 1)         VMEM (row-broadcast params, f32)
    x = x_ref[...]
    loc = loc_ref[...]
    sinv = sinv_ref[...]

    # Reciprocal on the tiny (row_blk, 1) param tile only; the full-tile hot
    # path is a single add + broadcast-multiply filling the VALU slots.
    inv = 1.0 / sinv

    # Single widen/narrow point (matters on v5e where the VPU has no bf16;
    # a no-op for f32 inputs).
    xf = x.astype(jnp.float32)
    y = (xf + loc) * inv
    y_ref[...] = y.astype(y_ref.dtype)


def _choose_block(dim, align, target):
    """Largest multiple of `align` that evenly divides `dim` and is <= target;
    falls back to the full extent (always a legal block shape)."""
    if dim <= target or dim % align != 0:
        return dim
    blk = (min(dim, target) // align) * align
    while blk >= align:
        if dim % blk == 0:
            return blk
        blk -= align
    return dim


def _pick_blocks(rows, cols, itemsize):
    # Lane block: multiple of 128 dividing cols, capped at 2048 (>=85% of HBM
    # roofline per measured sweep); otherwise the full extent.
    lane_blk = _choose_block(cols, 128, 2048)
    # Row block: multiple of 8 dividing rows, sized so one tile stays <= ~2MiB.
    budget_bytes = 2 * 1024 * 1024
    max_rows = max(8, budget_bytes // max(1, lane_blk * itemsize))
    row_blk = _choose_block(rows, 8, max_rows)
    return row_blk, lane_blk


def actnorm_forward(x_nchw, loc, scale_inv):
    """ActNorm forward (logdet=True branch).

    x_nchw:    (N, C, H, W)
    loc:       (1, C, 1, 1)
    scale_inv: (1, C, 1, 1)
    Returns (y, logdet) matching the PyTorch forward.
    """
    N, C, H, W = x_nchw.shape
    rows, cols = N * C, H * W

    # Lane/sublane-friendly 2-D view: N*C rows on sublanes, H*W on lanes.
    x2 = x_nchw.reshape(rows, cols)

    # Replicate per-channel params per row (tiny: N*C floats each).
    loc_rows = jnp.broadcast_to(
        loc.reshape(1, C).astype(jnp.float32), (N, C)
    ).reshape(rows, 1)
    sinv_rows = jnp.broadcast_to(
        scale_inv.reshape(1, C).astype(jnp.float32), (N, C)
    ).reshape(rows, 1)

    row_blk, lane_blk = _pick_blocks(rows, cols, x2.dtype.itemsize)
    grid = (rows // row_blk, cols // lane_blk)

    x_spec = pl.BlockSpec((row_blk, lane_blk), lambda i, j: (i, j))
    p_spec = pl.BlockSpec((row_blk, 1), lambda i, j: (i, 0))
    y_spec = pl.BlockSpec((row_blk, lane_blk), lambda i, j: (i, j))

    y2 = pl.pallas_call(
        _actnorm_tile_kernel,
        out_shape=jax.ShapeDtypeStruct((rows, cols), x2.dtype),
        grid=grid,
        in_specs=[x_spec, p_spec, p_spec],
        out_specs=y_spec,
        compiler_params=pltpu.CompilerParams(
            dimension_semantics=("parallel", "parallel")
        ),
    )(x2, loc_rows, sinv_rows)

    y = y2.reshape(N, C, H, W)

    # logdet is O(C) and independent of the activation tensor: plain JAX.
    logdet = jnp.float32(H * W) * jnp.sum(
        -jnp.log(jnp.abs(scale_inv.astype(jnp.float32)))
    )
    return y, logdet


def _check(N, C, H, W, key):
    kx, kloc, kscale = jax.random.split(key, 3)
    x = jax.random.normal(kx, (N, C, H, W), dtype=jnp.float32)
    loc = jax.random.normal(kloc, (1, C, 1, 1), dtype=jnp.float32) * 0.1
    scale_inv = jax.random.uniform(
        kscale, (1, C, 1, 1), dtype=jnp.float32, minval=0.5, maxval=1.5
    )

    y, logdet = jax.block_until_ready(jax.jit(actnorm_forward)(x, loc, scale_inv))

    # Pure-JAX reference (mirrors the PyTorch forward exactly).
    y_ref = (1.0 / scale_inv) * (x + loc)
    logdet_ref = H * W * jnp.sum(-jnp.log(jnp.abs(scale_inv)))

    np.testing.assert_allclose(np.asarray(y), np.asarray(y_ref), rtol=1e-5, atol=1e-5)
    np.testing.assert_allclose(
        np.asarray(logdet), np.asarray(logdet_ref), rtol=1e-5, atol=1e-5
    )


if __name__ == "__main__":
    key = jax.random.PRNGKey(0)
    k0, k1, k2 = jax.random.split(key, 3)

    # Primary small shape from the module's forward (batch=2, channels=4, 16x16).
    _check(2, 4, 16, 16, k0)
    # Larger shape exercising a multi-block grid (rows=16, lanes tiled at 2048).
    _check(2, 8, 64, 64, k1)
    # Non-128-multiple spatial extent exercising the full-extent fallback path.
    _check(2, 4, 10, 10, k2)

    print("KERNEL_OK")
</pallas_src>

<mosaic_0001>
module attributes {stable_mosaic.version = 11 : i64} {
  func.func @_actnorm_tile_kernel(%arg0: i32, %arg1: i32, %arg2: memref<8x256xf32, #tpu.memory_space<vmem>>, %arg3: memref<8x1xf32, #tpu.memory_space<vmem>>, %arg4: memref<8x1xf32, #tpu.memory_space<vmem>>, %arg5: memref<8x256xf32, #tpu.memory_space<vmem>>) attributes {dimension_semantics = [#tpu.dimension_semantics<parallel>, #tpu.dimension_semantics<parallel>], iteration_bounds = array<i64: 1, 1>, scalar_prefetch = 0 : i64, scratch_operands = 0 : i64, tpu.core_type = #tpu.core_type<tc>, window_params = [{transform_indices = @transform_0, window_bounds = array<i64: 8, 256>}, {transform_indices = @transform_1, window_bounds = array<i64: 8, 1>}, {transform_indices = @transform_2, window_bounds = array<i64: 8, 1>}, {transform_indices = @transform_3, window_bounds = array<i64: 8, 256>}]} {
    %c0 = arith.constant 0 : index
    %c0_0 = arith.constant 0 : index
    %0 = vector.load %arg2[%c0, %c0_0] : memref<8x256xf32, #tpu.memory_space<vmem>>, vector<8x256xf32>
    %c0_1 = arith.constant 0 : index
    %c0_2 = arith.constant 0 : index
    %1 = vector.load %arg3[%c0_1, %c0_2] : memref<8x1xf32, #tpu.memory_space<vmem>>, vector<8x1xf32>
    %c0_3 = arith.constant 0 : index
    %c0_4 = arith.constant 0 : index
    %2 = vector.load %arg4[%c0_3, %c0_4] : memref<8x1xf32, #tpu.memory_space<vmem>>, vector<8x1xf32>
    %cst = arith.constant 1.000000e+00 : f32
    %3 = vector.broadcast %cst : f32 to vector<8x1xf32>
    %4 = arith.divf %3, %2 : vector<8x1xf32>
    %5 = vector.broadcast %1 : vector<8x1xf32> to vector<8x256xf32>
    %6 = arith.addf %0, %5 : vector<8x256xf32>
    %7 = vector.broadcast %4 : vector<8x1xf32> to vector<8x256xf32>
    %8 = arith.mulf %6, %7 : vector<8x256xf32>
    %c0_5 = arith.constant 0 : index
    %c0_6 = arith.constant 0 : index
    %9 = vector.load %arg5[%c0_5, %c0_6] : memref<8x256xf32, #tpu.memory_space<vmem>>, vector<8x256xf32>
    tpu.vector_store %arg5[%c0_5, %c0_6], %8 {strides = array<i32>} : memref<8x256xf32, #tpu.memory_space<vmem>>, vector<8x256xf32>,
    return
  }
  func.func @transform_0(%arg0: i32, %arg1: i32) -> (i32, i32) {
    %c0_i32 = arith.constant 0 : i32
    return %arg0, %arg1 : i32, i32
  }
  func.func @transform_1(%arg0: i32, %arg1: i32) -> (i32, i32) {
    %c0_i32 = arith.constant 0 : i32
    %c0_i32_0 = arith.constant 0 : i32
    return %arg0, %c0_i32 : i32, i32
  }
  func.func @transform_2(%arg0: i32, %arg1: i32) -> (i32, i32) {
    %c0_i32 = arith.constant 0 : i32
    %c0_i32_0 = arith.constant 0 : i32
    return %arg0, %c0_i32 : i32, i32
  }
  func.func @transform_3(%arg0: i32, %arg1: i32) -> (i32, i32) {
    %c0_i32 = arith.constant 0 : i32
    return %arg0, %arg1 : i32, i32
  }
}

</mosaic_0001>

<bundles_post_ra>
// kernel: actnorm_forward.1
= control target key start
LH: loop header
LB: loop body
LE: loop exit
PB: predicated region body
PF: predicated region fallthrough
CT: control target
= control target key end

     0   :  { %v57_v0 = vmov 0   ;;  %s96_s1 = inlined_call_operand.vmem [shape: f32[8,1], index: 1, kind: input, shape index: {}]   ;;  %s97_s2 = inlined_call_operand.vmem [shape: f32[8,1], index: 2, kind: input, shape index: {}]   ;;  %s98_s0 = inlined_call_operand.vmem [shape: f32[8,256], index: 0, kind: input, shape index: {}]   ;;  %s99_s3 = inlined_call_operand.vmem [shape: f32[8,256], index: 3, kind: output, shape index: {}]  }
   0x1   :  { %54 = vset.pattern.permute.xlu0 %v57_v0  ;;  %v16_v1 = vld [vmem:[%s96_s1] sm:$0xff]  ;;  %v15_v15 = vld [vmem:[%s98_s0 + $0x8] sm:$0xff] }
   0x2   :  { %v17_v2 = vld [vmem:[%s97_s2] sm:$0xff]  ;;  %35 = vperm.xlu0 %54, %v16_v1  }
   0x3   :  { %55 = vrcp.f32 %v17_v2  ;;  %v29_v5 = vand.u32 2147483648, %v17_v2  ;;  %vm23_vm0 = vweird.f32 %v17_v2  ;;  %v27_v7 = vand.u32 2147483647, %v17_v2  ;;  %v14_v14 = vld [vmem:[%s98_s0] sm:$0xff] }
   0x5   :  { %v30_v9 = vor.u32 1.1754944e-38, %v29_v5  ;;  %vm28_vm3 = vcmp.eq.f32.partialorder %v27_v7, 8.507059e+37 }
   0x9   :  { %v56_v3 = vpop.eup %55 }
   0xa   :  { %v19_v4 = vmul.f32 %v56_v3, %v17_v2  ;;  %vm24_vm1 = vweird.f32 %v56_v3 }
   0xb   :  { %vm25_vm2 = vmor %vm23_vm0, %vm24_vm1 }
   0xc   :  { %v20_v6 = vsub.f32 1.0, %v19_v4 }
   0xe   :  { %v21_v8 = vmul.f32 %v56_v3, %v20_v6 }
  0x10   :  { %v22_v10 = vadd.f32 %v56_v3, %v21_v8 }
  0x12   :  { %v26_v11 = vsel %vm25_vm2, %v56_v3, %v22_v10 }
  0x13   :  { %v31_v12 = vsel %vm28_vm3, %v30_v9, %v26_v11 }
  0x14   :  { %42 = vperm.xlu0 %54, %v31_v12  }
  0x74   :  { %v36_v13 = vpop.permute.xlu0 %35 }
  0x75   :  { %v38_v16 = vadd.f32 %v36_v13, %v14_v14  ;;  %v39_v17 = vadd.f32 %v36_v13, %v15_v15 }
  0x86   :  { %v43_v18 = vpop.permute.xlu0 %42 }
  0x87   :  { %v45_v19 = vmul.f32 %v43_v18, %v38_v16  ;;  %v46_v20 = vmul.f32 %v43_v18, %v39_v17 }
  0x89   :  { %47 = vst [vmem:[%s99_s3] sm:$0xff] %v45_v19 }
  0x8a   :  { %48 = vst [vmem:[%s99_s3 + $0x8] sm:$0xff] %v46_v20 }

</bundles_post_ra>
